<compile_context>
chip_gen: v7x
topology: tpu7x:2x2x1
jax: 0.10.0
libtpu: 0.0.40
codegen_flags: <defaults>
</compile_context>

<pallas_src>
import math
import jax
import jax.numpy as jnp
from jax import lax
from jax.experimental import pallas as pl
from jax.experimental.pallas import tpu as pltpu

LN_EPS = 1e-12
INV_SQRT2 = 1.0 / math.sqrt(2.0)


def _round_up(x, m):
    return ((x + m - 1) // m) * m


def _classifier_kernel(x_ref, w1_ref, b1_ref, g_ref, beta_ref, w2_ref, b2_ref, o_ref):
    # ---- Linear 1: (tm, in) @ (in, hid) + (1, hid) ----
    x = x_ref[...].astype(jnp.float32)
    h = jnp.dot(x, w1_ref[...], preferred_element_type=jnp.float32) + b1_ref[...]

    # ---- GeLU (exact erf form, matching torch.erf variant) ----
    # multiply by 1/sqrt(2) instead of dividing; erf goes to the EUP.
    h = h * (0.5 * (1.0 + lax.erf(h * INV_SQRT2)))

    # ---- BertLayerNorm over the hidden (last) dim ----
    # one-pass stats: a single extra elementwise h*h instead of a second
    # cross-lane reduction over (h - u)^2; rsqrt lowers to the EUP slot.
    u = jnp.mean(h, axis=-1, keepdims=True)
    s = jnp.maximum(jnp.mean(h * h, axis=-1, keepdims=True) - u * u, 0.0)
    hn = (h - u) * lax.rsqrt(s + LN_EPS)
    hn = hn * g_ref[...] + beta_ref[...]

    # ---- Linear 2: (tm, hid) @ (hid, out_pad) + (1, out_pad) ----
    out = jnp.dot(hn, w2_ref[...], preferred_element_type=jnp.float32) + b2_ref[...]
    o_ref[...] = out.astype(o_ref.dtype)


def simple_classifier(x, w1, b1, gamma, beta, w2, b2, *, tm=None):
    B, in_dim = x.shape
    hid_dim = w1.shape[1]
    out_dim = w2.shape[1]

    # --- choose the row tile: as large as reasonable, sublane(8)-aligned ---
    if tm is None:
        tm = min(512, _round_up(B, 8))
        # v7x has 2 TensorCores: make sure the "parallel" grid axis has >= 2
        # steps whenever there are enough rows so both cores get work.
        if B >= 16 and _round_up(B, 8) // tm < 2:
            tm = _round_up(_round_up(B, 8) // 2, 8)
    tm = max(8, _round_up(tm, 8))
    B_pad = _round_up(B, tm)

    # --- lane-dense output: pad the output feature dim to a multiple of 128 ---
    out_pad = _round_up(out_dim, 128)

    xp = x if B_pad == B else jnp.pad(x, ((0, B_pad - B), (0, 0)))
    w2p = w2 if out_pad == out_dim else jnp.pad(w2, ((0, 0), (0, out_pad - out_dim)))
    b2p = b2 if out_pad == out_dim else jnp.pad(b2, ((0, out_pad - out_dim),))

    # biases / LN params as (1, dim) 2-D rows for clean VMEM layout.
    b1r = b1.reshape(1, hid_dim)
    gr = gamma.reshape(1, hid_dim)
    br = beta.reshape(1, hid_dim)
    b2r = b2p.reshape(1, out_pad)

    grid = (B_pad // tm,)

    # advisory cost estimate so XLA can schedule/overlap this call.
    flops = 2 * B_pad * (in_dim * hid_dim + hid_dim * out_pad)
    transcendentals = B_pad * hid_dim + B_pad  # erf per element + rsqrt per row
    bytes_accessed = 4 * (
        xp.size + w1.size + b1r.size + gr.size + br.size + w2p.size + b2r.size
        + B_pad * out_pad
    )

    out = pl.pallas_call(
        _classifier_kernel,
        out_shape=jax.ShapeDtypeStruct((B_pad, out_pad), x.dtype),
        grid_spec=pltpu.PrefetchScalarGridSpec(
            num_scalar_prefetch=0,
            grid=grid,
            in_specs=[
                pl.BlockSpec((tm, in_dim), lambda i: (i, 0)),        # x tile
                pl.BlockSpec((in_dim, hid_dim), lambda i: (0, 0)),   # W1 (full)
                pl.BlockSpec((1, hid_dim), lambda i: (0, 0)),        # b1
                pl.BlockSpec((1, hid_dim), lambda i: (0, 0)),        # LN gamma
                pl.BlockSpec((1, hid_dim), lambda i: (0, 0)),        # LN beta
                pl.BlockSpec((hid_dim, out_pad), lambda i: (0, 0)),  # W2 (lane-padded)
                pl.BlockSpec((1, out_pad), lambda i: (0, 0)),        # b2 (lane-padded)
            ],
            out_specs=pl.BlockSpec((tm, out_pad), lambda i: (i, 0)),
        ),
        compiler_params=pltpu.CompilerParams(
            dimension_semantics=("parallel",)),
        cost_estimate=pl.CostEstimate(
            flops=int(flops),
            transcendentals=int(transcendentals),
            bytes_accessed=int(bytes_accessed)),
    )(xp, w1, b1r, gr, br, w2p, b2r)

    # slice away batch padding and lane padding.
    return out[:B, :out_dim]


def _xavier_uniform(key, fan_in, fan_out, dtype=jnp.float32):
    # matches nn.init.xavier_uniform_ on a (fan_out, fan_in) PyTorch weight;
    # we store it transposed as (fan_in, fan_out).
    bound = math.sqrt(6.0 / (fan_in + fan_out))
    return jax.random.uniform(key, (fan_in, fan_out), dtype, -bound, bound)


def _reference(x, w1, b1, gamma, beta, w2, b2):
    # faithful translation of the PyTorch module (erf-GeLU, two-pass LN).
    h = x @ w1 + b1
    h = h * 0.5 * (1.0 + lax.erf(h / math.sqrt(2.0)))
    u = jnp.mean(h, axis=-1, keepdims=True)
    s = jnp.mean((h - u) ** 2, axis=-1, keepdims=True)
    hn = (h - u) / jnp.sqrt(s + LN_EPS)
    hn = hn * gamma + beta
    return hn @ w2 + b2


if __name__ == "__main__":
    B, in_dim, hid_dim, out_dim = 8, 32, 64, 16

    key = jax.random.PRNGKey(0)
    kx, k1, k2 = jax.random.split(key, 3)

    x = jax.random.normal(kx, (B, in_dim), jnp.float32)

    # deterministic init: xavier-uniform weights, zero biases,
    # BertLayerNorm weight=1, bias=0 (as in init_weights).
    w1 = _xavier_uniform(k1, in_dim, hid_dim)
    b1 = jnp.zeros((hid_dim,), jnp.float32)
    gamma = jnp.ones((hid_dim,), jnp.float32)
    beta = jnp.zeros((hid_dim,), jnp.float32)
    w2 = _xavier_uniform(k2, hid_dim, out_dim)
    b2 = jnp.zeros((out_dim,), jnp.float32)

    out = simple_classifier(x, w1, b1, gamma, beta, w2, b2)
    out = jax.block_until_ready(out)

    ref = _reference(x, w1, b1, gamma, beta, w2, b2)
    assert out.shape == (B, out_dim)
    assert jnp.allclose(out, ref, atol=1e-5, rtol=1e-5), "mismatch vs JAX reference"

    print("KERNEL_OK")
</pallas_src>

<mosaic_0001>
module attributes {stable_mosaic.version = 11 : i64} {
  func.func @_classifier_kernel(%arg0: i32, %arg1: memref<8x32xf32, #tpu.memory_space<vmem>>, %arg2: memref<32x64xf32, #tpu.memory_space<vmem>>, %arg3: memref<1x64xf32, #tpu.memory_space<vmem>>, %arg4: memref<1x64xf32, #tpu.memory_space<vmem>>, %arg5: memref<1x64xf32, #tpu.memory_space<vmem>>, %arg6: memref<64x128xf32, #tpu.memory_space<vmem>>, %arg7: memref<1x128xf32, #tpu.memory_space<vmem>>, %arg8: memref<8x128xf32, #tpu.memory_space<vmem>>) attributes {dimension_semantics = [#tpu.dimension_semantics<parallel>], iteration_bounds = array<i64: 1>, scalar_prefetch = 0 : i64, scratch_operands = 0 : i64, tpu.core_type = #tpu.core_type<tc>, window_params = [{transform_indices = @transform_0, window_bounds = array<i64: 8, 32>}, {pipeline_mode = #tpu.pipeline_mode<synchronous>, transform_indices = @transform_1, window_bounds = array<i64: 32, 64>}, {pipeline_mode = #tpu.pipeline_mode<synchronous>, transform_indices = @transform_2, window_bounds = array<i64: 1, 64>}, {pipeline_mode = #tpu.pipeline_mode<synchronous>, transform_indices = @transform_3, window_bounds = array<i64: 1, 64>}, {pipeline_mode = #tpu.pipeline_mode<synchronous>, transform_indices = @transform_4, window_bounds = array<i64: 1, 64>}, {pipeline_mode = #tpu.pipeline_mode<synchronous>, transform_indices = @transform_5, window_bounds = array<i64: 64, 128>}, {pipeline_mode = #tpu.pipeline_mode<synchronous>, transform_indices = @transform_6, window_bounds = array<i64: 1, 128>}, {transform_indices = @transform_7, window_bounds = array<i64: 8, 128>}]} {
    %c0 = arith.constant 0 : index
    %c0_0 = arith.constant 0 : index
    %0 = vector.load %arg1[%c0, %c0_0] : memref<8x32xf32, #tpu.memory_space<vmem>>, vector<8x32xf32>
    %c0_1 = arith.constant 0 : index
    %c0_2 = arith.constant 0 : index
    %1 = vector.load %arg2[%c0_1, %c0_2] : memref<32x64xf32, #tpu.memory_space<vmem>>, vector<32x64xf32>
    %cst = arith.constant dense<0.000000e+00> : vector<8x64xf32>
    %2 = tpu.matmul %0, %1, %cst {dimension_numbers = #tpu.dot_dimension_numbers<[1], [0], [0], [1], [0, 0, 1, 1], [], []>} : vector<8x32xf32>, vector<32x64xf32>, vector<8x64xf32> -> vector<8x64xf32>
    %c0_3 = arith.constant 0 : index
    %c0_4 = arith.constant 0 : index
    %3 = vector.load %arg3[%c0_3, %c0_4] : memref<1x64xf32, #tpu.memory_space<vmem>>, vector<1x64xf32>
    %4 = vector.broadcast %3 : vector<1x64xf32> to vector<8x64xf32>
    %5 = arith.addf %2, %4 : vector<8x64xf32>
    %cst_5 = arith.constant 0.707106769 : f32
    %6 = vector.broadcast %cst_5 : f32 to vector<8x64xf32>
    %7 = arith.mulf %5, %6 : vector<8x64xf32>
    %8 = math.erf %7 : vector<8x64xf32>
    %cst_6 = arith.constant 1.000000e+00 : f32
    %9 = vector.broadcast %cst_6 : f32 to vector<8x64xf32>
    %10 = arith.addf %9, %8 : vector<8x64xf32>
    %cst_7 = arith.constant 5.000000e-01 : f32
    %11 = vector.broadcast %cst_7 : f32 to vector<8x64xf32>
    %12 = arith.mulf %11, %10 : vector<8x64xf32>
    %13 = arith.mulf %5, %12 : vector<8x64xf32>
    %cst_8 = arith.constant dense<0.000000e+00> : vector<8xf32>
    %14 = vector.multi_reduction <add>, %13, %cst_8 [1] : vector<8x64xf32> to vector<8xf32>
    %15 = vector.shape_cast %14 : vector<8xf32> to vector<8x1xf32>
    %cst_9 = arith.constant 6.400000e+01 : f32
    %16 = vector.broadcast %cst_9 : f32 to vector<8x1xf32>
    %17 = arith.divf %15, %16 : vector<8x1xf32>
    %18 = arith.mulf %13, %13 : vector<8x64xf32>
    %cst_10 = arith.constant dense<0.000000e+00> : vector<8xf32>
    %19 = vector.multi_reduction <add>, %18, %cst_10 [1] : vector<8x64xf32> to vector<8xf32>
    %20 = vector.shape_cast %19 : vector<8xf32> to vector<8x1xf32>
    %cst_11 = arith.constant 6.400000e+01 : f32
    %21 = vector.broadcast %cst_11 : f32 to vector<8x1xf32>
    %22 = arith.divf %20, %21 : vector<8x1xf32>
    %23 = arith.mulf %17, %17 : vector<8x1xf32>
    %24 = arith.subf %22, %23 : vector<8x1xf32>
    %cst_12 = arith.constant 0.000000e+00 : f32
    %25 = vector.broadcast %cst_12 : f32 to vector<8x1xf32>
    %26 = arith.maximumf %24, %25 : vector<8x1xf32>
    %27 = vector.broadcast %17 : vector<8x1xf32> to vector<8x64xf32>
    %28 = arith.subf %13, %27 : vector<8x64xf32>
    %cst_13 = arith.constant 9.99999996E-13 : f32
    %29 = vector.broadcast %cst_13 : f32 to vector<8x1xf32>
    %30 = arith.addf %26, %29 : vector<8x1xf32>
    %31 = math.rsqrt %30 : vector<8x1xf32>
    %32 = vector.broadcast %31 : vector<8x1xf32> to vector<8x64xf32>
    %33 = arith.mulf %28, %32 : vector<8x64xf32>
    %c0_14 = arith.constant 0 : index
    %c0_15 = arith.constant 0 : index
    %34 = vector.load %arg4[%c0_14, %c0_15] : memref<1x64xf32, #tpu.memory_space<vmem>>, vector<1x64xf32>
    %35 = vector.broadcast %34 : vector<1x64xf32> to vector<8x64xf32>
    %36 = arith.mulf %33, %35 : vector<8x64xf32>
    %c0_16 = arith.constant 0 : index
    %c0_17 = arith.constant 0 : index
    %37 = vector.load %arg5[%c0_16, %c0_17] : memref<1x64xf32, #tpu.memory_space<vmem>>, vector<1x64xf32>
    %38 = vector.broadcast %37 : vector<1x64xf32> to vector<8x64xf32>
    %39 = arith.addf %36, %38 : vector<8x64xf32>
    %c0_18 = arith.constant 0 : index
    %c0_19 = arith.constant 0 : index
    %40 = vector.load %arg6[%c0_18, %c0_19] : memref<64x128xf32, #tpu.memory_space<vmem>>, vector<64x128xf32>
    %cst_20 = arith.constant dense<0.000000e+00> : vector<8x128xf32>
    %41 = tpu.matmul %39, %40, %cst_20 {dimension_numbers = #tpu.dot_dimension_numbers<[1], [0], [0], [1], [0, 0, 1, 1], [], []>} : vector<8x64xf32>, vector<64x128xf32>, vector<8x128xf32> -> vector<8x128xf32>
    %c0_21 = arith.constant 0 : index
    %c0_22 = arith.constant 0 : index
    %42 = vector.load %arg7[%c0_21, %c0_22] : memref<1x128xf32, #tpu.memory_space<vmem>>, vector<1x128xf32>
    %43 = vector.broadcast %42 : vector<1x128xf32> to vector<8x128xf32>
    %44 = arith.addf %41, %43 : vector<8x128xf32>
    %c0_23 = arith.constant 0 : index
    %c0_24 = arith.constant 0 : index
    %45 = vector.load %arg8[%c0_23, %c0_24] : memref<8x128xf32, #tpu.memory_space<vmem>>, vector<8x128xf32>
    tpu.vector_store %arg8[%c0_23, %c0_24], %44 {strides = array<i32>} : memref<8x128xf32, #tpu.memory_space<vmem>>, vector<8x128xf32>,
    return
  }
  func.func @transform_0(%arg0: i32) -> (i32, i32) {
    %c0_i32 = arith.constant 0 : i32
    %c0_i32_0 = arith.constant 0 : i32
    return %arg0, %c0_i32 : i32, i32
  }
  func.func @transform_1(%arg0: i32) -> (i32, i32) {
    %c0_i32 = arith.constant 0 : i32
    %c0_i32_0 = arith.constant 0 : i32
    %c0_i32_1 = arith.constant 0 : i32
    return %c0_i32, %c0_i32_0 : i32, i32
  }
  func.func @transform_2(%arg0: i32) -> (i32, i32) {
    %c0_i32 = arith.constant 0 : i32
    %c0_i32_0 = arith.constant 0 : i32
    %c0_i32_1 = arith.constant 0 : i32
    return %c0_i32, %c0_i32_0 : i32, i32
  }
  func.func @transform_3(%arg0: i32) -> (i32, i32) {
    %c0_i32 = arith.constant 0 : i32
    %c0_i32_0 = arith.constant 0 : i32
    %c0_i32_1 = arith.constant 0 : i32
    return %c0_i32, %c0_i32_0 : i32, i32
  }
  func.func @transform_4(%arg0: i32) -> (i32, i32) {
    %c0_i32 = arith.constant 0 : i32
    %c0_i32_0 = arith.constant 0 : i32
    %c0_i32_1 = arith.constant 0 : i32
    return %c0_i32, %c0_i32_0 : i32, i32
  }
  func.func @transform_5(%arg0: i32) -> (i32, i32) {
    %c0_i32 = arith.constant 0 : i32
    %c0_i32_0 = arith.constant 0 : i32
    %c0_i32_1 = arith.constant 0 : i32
    return %c0_i32, %c0_i32_0 : i32, i32
  }
  func.func @transform_6(%arg0: i32) -> (i32, i32) {
    %c0_i32 = arith.constant 0 : i32
    %c0_i32_0 = arith.constant 0 : i32
    %c0_i32_1 = arith.constant 0 : i32
    return %c0_i32, %c0_i32_0 : i32, i32
  }
  func.func @transform_7(%arg0: i32) -> (i32, i32) {
    %c0_i32 = arith.constant 0 : i32
    %c0_i32_0 = arith.constant 0 : i32
    return %arg0, %c0_i32 : i32, i32
  }
}

</mosaic_0001>

<bundles_post_ra>
// kernel: tpu_custom_call.1
= control target key start
LH: loop header
LB: loop body
LE: loop exit
PB: predicated region body
PF: predicated region fallthrough
CT: control target
= control target key end

     0   :  { %12 = vsyncpa [#allocation3], 0  ;;  %s589_s0 = inlined_call_operand.hbm [shape: f32[8,32], index: 0, kind: input, shape index: {}]   ;;  %s590_s1 = inlined_call_operand.hbm [shape: f32[32,64], index: 1, kind: input, shape index: {}]   ;;  %s591_s2 = inlined_call_operand.vmem [shape: f32[1,64], index: 2, kind: input, shape index: {}]   ;;  %s592_s3 = inlined_call_operand.vmem [shape: f32[1,64], index: 3, kind: input, shape index: {}]   ;;  %s593_s4 = inlined_call_operand.vmem [shape: f32[1,64], index: 4, kind: input, shape index: {}]   ;;  %s594_s5 = inlined_call_operand.hbm [shape: f32[64,128], index: 5, kind: input, shape index: {}]   ;;  %s595_s6 = inlined_call_operand.vmem [shape: f32[1,128], index: 6, kind: input, shape index: {}]   ;;  %s596_s7 = inlined_call_operand.hbm [shape: f32[8,128], index: 7, kind: output, shape index: {}]  }
   0x1   :  { %13 = vsyncpa [#allocation6], 0 }
   0x2   :  { %14 = vsyncpa [#allocation4], 0  ;;  %s471_s24 = smov [#allocation5]   ;;  %s377_s28 = scalar_lea.hbm %s590_s1, 512 }
   0x3   :  { %s30_s25 = sshll.u32 %s471_s24, 4  ;;  %p378_p0 = scmp.ne.s32.totalorder %s590_s1, %s377_s28  ;;  %s31_s25 = int_to_ptr.vmem [resolvable:$true] %s30_s25 }
   0x4   :  { %p381_p1 = scmp.lt.u32.totalorder %s377_s28, %s590_s1 }
   0x6   :  { %p383_p2 = pnand %p381_p1, %p378_p0 }
   0x8   :  { %386 = shalt.err (!%p383_p2)
}
   0x9   :  { %s387_s10 = scalar_lea.vmem %s31_s25, 512  ;;  %p392_p4 = scmp.lt.s32.totalorder %s31_s25, %s31_s25 }
   0xa   :  { %p388_p3 = scmp.ne.s32.totalorder %s31_s25, %s387_s10  ;;  %p393_p5 = scmp.lt.s32.totalorder %s387_s10, %s387_s10 }
   0xc   :  { %p394_p6 = por %p393_p5, %p392_p4 }
   0xe   :  { %p395_p7 = pnand %p394_p6, %p388_p3 }
  0x10   :  { %398 = shalt.err (!%p395_p7)
}
  0x11   :  { %s472_s11 = smov 128   ;;  %s473_s12 = smov 8  }
  0x12   :  { %36 = dma.hbm_to_vmem [thread:$0]  %s590_s1, 512, %s31_s25, [#allocation6], %s472_s11, %s472_s11, %s473_s12  }
  0x13   :  { %s474_s15 = smov [#allocation2]   ;;  %s475_s17 = smov [#allocation7]  }
  0x14   :  { %s21_s16 = sshll.u32 %s474_s15, 4  ;;  %s48_s18 = sshll.u32 %s475_s17, 4  ;;  %s22_s16 = int_to_ptr.vmem [resolvable:$true] %s21_s16  ;;  %s49_s18 = int_to_ptr.vmem [resolvable:$true] %s48_s18 }
  0x15   :  { %s399_s21 = scalar_lea.hbm %s589_s0, 128 }
  0x16   :  { %p400_p8 = scmp.ne.s32.totalorder %s589_s0, %s399_s21  ;;  %p403_p9 = scmp.lt.u32.totalorder %s399_s21, %s589_s0 }
  0x18   :  { %p405_p10 = pnand %p403_p9, %p400_p8 }
  0x1a   :  { %408 = shalt.err (!%p405_p10)
}
  0x1b   :  { %s409_s1 = scalar_lea.vmem %s22_s16, 128  ;;  %p414_p12 = scmp.lt.s32.totalorder %s22_s16, %s22_s16 }
  0x1c   :  { %p410_p11 = scmp.ne.s32.totalorder %s22_s16, %s409_s1  ;;  %p415_p13 = scmp.lt.s32.totalorder %s409_s1, %s409_s1 }
  0x1e   :  { %p416_p0 = por %p415_p13, %p414_p12 }
  0x20   :  { %p417_p1 = pnand %p416_p0, %p410_p11 }
  0x22   :  { %420 = shalt.err (!%p417_p1)
}
  0x23   :  { %24 = dma.hbm_to_vmem [thread:$0]  %s589_s0, 128, %s22_s16, [#allocation3]  }
  0x24   :  { %s421_s30 = scalar_lea.hbm %s594_s5, 1024 }
  0x25   :  { %p422_p2 = scmp.ne.s32.totalorder %s594_s5, %s421_s30  ;;  %p425_p3 = scmp.lt.u32.totalorder %s421_s30, %s594_s5 }
  0x27   :  { %p427_p4 = pnand %p425_p3, %p422_p2 }
  0x29   :  { %430 = shalt.err (!%p427_p4)
}
  0x2a   :  { %s431_s14 = scalar_lea.vmem %s49_s18, 1024  ;;  %p436_p6 = scmp.lt.s32.totalorder %s49_s18, %s49_s18 }
  0x2b   :  { %p432_p5 = scmp.ne.s32.totalorder %s49_s18, %s431_s14  ;;  %p437_p7 = scmp.lt.s32.totalorder %s431_s14, %s431_s14 }
  0x2d   :  { %p438_p8 = por %p437_p7, %p436_p6 }
  0x2f   :  { %p439_p9 = pnand %p438_p8, %p432_p5 }
  0x31   :  { %442 = shalt.err (!%p439_p9)
}
  0x32   :  { %54 = dma.hbm_to_vmem [thread:$0]  %s594_s5, 1024, %s49_s18, [#allocation6], %s472_s11, %s472_s11, %s473_s12  }
  0x33   :  { %465 = dma.done.wait [#allocation3], 128  }
  0x34   :  { %466 = vsyncadd [#allocation3], 4294967168 }
  0x35   :  { %467 = dma.done.wait [#allocation6], 1536  }
  0x36   :  { %468 = vsyncadd [#allocation6], 4294965760  ;;  %v476_v0 = vmov 0.0|0.0   ;;  %vm477_vm0 = vmmov 0   ;;  %v478_v1 = vmov 0.0   ;;  %v67_v2 = vld [vmem:[#allocation5] sm:$0xff] }
  0x37   :  { %346 = vmatprep.subr.bf16.mxu0 %v476_v0  ;;  %324 = vmatprep.mubr.msk.f32.mxu0 %vm477_vm0, %v478_v1  ;;  %v68_v3 = vld [vmem:[#allocation5 + $0x8] sm:$0xff]  ;;  %v69_v4 = vld [vmem:[#allocation5 + $0x10] sm:$0xff]  ;;  %v70_v6 = vld [vmem:[#allocation5 + $0x18] sm:$0xff]  ;;  %vm78_vm1 = vcmask 261120   ;;  %vm157_vm2 = vcmask 523264   ;;  %s479_s20 = smov [#allocation8]  }
  0x38   :  { %352 = vmatprep.subr.bf16.mxu1 %v476_v0  ;;  %343 = vmatprep.mubr.msk.f32.mxu1 %vm477_vm0, %v478_v1  ;;  %v347_v5 = vpack.c.bf16 %v68_v3, %v67_v2  ;;  %v350_v7 = vpack.c.bf16 %v70_v6, %v69_v4  ;;  %v66_v8 = vld [vmem:[#allocation2] sm:$0xff]  ;;  %v191_v21 = vld [vmem:[#allocation7] sm:$0xff]  ;;  %v192_v22 = vld [vmem:[#allocation7 + $0x8] sm:$0xff]  ;;  %s286_s21 = sshll.u32 %s479_s20, 4  ;;  %s287_s21 = int_to_ptr.vmem [resolvable:$true] %s286_s21 }
  0x39   :  { %v296_v9 = vld [vmem:[%s591_s2] ss:$0 sm:$0xff]  ;;  %v353_v23 = vpack.c.bf16 %v192_v22, %v191_v21  ;;  %v193_v24 = vld [vmem:[#allocation7 + $0x10] sm:$0xff]  ;;  %v195_v27 = vld [vmem:[#allocation7 + $0x20] sm:$0xff]  ;;  %p448_p11 = scmp.lt.s32.totalorder %s287_s21, %s287_s21 }
  0x3a   :  { %348 = vmatpush3.bf16.msra.mxu0 %v347_v5  ;;  %v194_v25 = vld [vmem:[#allocation7 + $0x18] sm:$0xff]  ;;  %v196_v28 = vld [vmem:[#allocation7 + $0x28] sm:$0xff]  ;;  %v197_v30 = vld [vmem:[#allocation7 + $0x30] sm:$0xff] }
  0x3b   :  { %349 = vmatprep.subr.bf16.mxu0 %v476_v0  ;;  %354 = vmatpush3.bf16.msra.mxu1 %v353_v23  ;;  %v356_v26 = vpack.c.bf16 %v194_v25, %v193_v24  ;;  %v359_v29 = vpack.c.bf16 %v196_v28, %v195_v27  ;;  %v198_v31 = vld [vmem:[#allocation7 + $0x38] sm:$0xff] }
  0x3c   :  { %355 = vmatprep.subr.bf16.mxu1 %v476_v0  ;;  %v362_v32 = vpack.c.bf16 %v198_v31, %v197_v30  ;;  %v298_v43 = vld [vmem:[%s592_s3] ss:$0 sm:$0xff]  ;;  %s443_s3 = scalar_lea.vmem %s287_s21, 128 }
  0x3d   :  { %v299_v45 = vld [vmem:[%s593_s4] ss:$0 sm:$0xff]  ;;  %p444_p10 = scmp.ne.s32.totalorder %s287_s21, %s443_s3  ;;  %p449_p12 = scmp.lt.s32.totalorder %s443_s3, %s443_s3 }
  0x3e   :  { %351 = vmatpush3.bf16.msra.mxu0 %v350_v7  ;;  %v300_v48 = vld [vmem:[%s595_s6] ss:$0 sm:$0xff] }
  0x3f   :  { %357 = vmatpush3.bf16.msra.mxu1 %v356_v26  ;;  %p450_p13 = por %p449_p12, %p448_p11 }
  0x40   :  { %358 = vmatprep.subr.bf16.mxu1 %v476_v0 }
  0x41   :  { %325 = vmatmul.mubr.msk.f32.vlgmr.msra.gmra.mrb[0].mxu0 %vm78_vm1, %v66_v8  ;;  %p451_p0 = pnand %p450_p13, %p444_p10 }
  0x43   :  { %360 = vmatpush3.bf16.msra.mxu1 %v359_v29 }
  0x44   :  { %361 = vmatprep.subr.bf16.mxu1 %v476_v0 }
  0x47   :  { %363 = vmatpush3.bf16.msra.mxu1 %v362_v32 }
 0x114   :  { %v148_v10 = vpop.f32.mrb[0].mxu0 }
 0x115   :  { %v149_v11 = vadd.f32 %v296_v9, %v148_v10  ;;  %v326_v12 = vpop.f32.mrb[1].mxu0 }
 0x117   :  { %v152_v13 = vmul.f32 0.70710677, %v149_v11 }
 0x119   :  { %373 = verf.f32 %v152_v13 }
 0x123   :  { %v374_v14 = vpop.eup %373 }
 0x124   :  { %v154_v15 = vadd.f32 1.0, %v374_v14 }
 0x126   :  { %v155_v16 = vmul.f32 0.5, %v154_v15 }
 0x128   :  { %v156_v17 = vmul.f32 %v155_v16, %v149_v11 }
 0x12a   :  { %v158_v18 = vsel %vm157_vm2, %v156_v17, 0.0  ;;  %v163_v19 = vmul.f32 %v156_v17, %v156_v17 }
 0x12b   :  { %159 = vadd.xlane.f32.xlu0 %v158_v18 }
 0x12c   :  { %v164_v20 = vsel %vm157_vm2, %v163_v19, 0.0 }
 0x12f   :  { %165 = vadd.xlane.f32.xlu0 %v164_v20 }
 0x1b8   :  { %v160_v33 = vpop.xlane.xlu0 %159 }
 0x1b9   :  { %v162_v34 = vmul.f32 0.015625, %v160_v33 }
 0x1bb   :  { %v168_v36 = vmul.f32 %v162_v34, %v162_v34  ;;  %v171_v41 = vsub.f32 %v156_v17, %v162_v34 }
 0x1bc   :  { %v166_v35 = vpop.xlane.xlu0 %165 }
 0x1bd   :  { %v167_v37 = vmul.f32 0.015625, %v166_v35 }
 0x1bf   :  { %v169_v38 = vsub.f32 %v167_v37, %v168_v36 }
 0x1c1   :  { %v170_v39 = vmax.f32 %v169_v38, 0.0 }
 0x1c3   :  { %v172_v40 = vadd.f32 1e-12, %v170_v39 }
 0x1c5   :  { %375 = vrsqrt.f32 %v172_v40 }
 0x1cf   :  { %v376_v42 = vpop.eup %375 }
 0x1d0   :  { %v174_v44 = vmul.f32 %v376_v42, %v171_v41 }
 0x1d2   :  { %v182_v46 = vmul.f32 %v298_v43, %v174_v44 }
 0x1d4   :  { %v190_v47 = vadd.f32 %v299_v45, %v182_v46 }
 0x1d6   :  { %344 = vmatmul.mubr.msk.f32.vlgmr.msra.gmra.mrb[0].mxu1 %vm157_vm2, %v190_v47 }
 0x2a9   :  { %v275_v49 = vpop.f32.mrb[0].mxu1 }
 0x2aa   :  { %v276_v50 = vadd.f32 %v300_v48, %v275_v49  ;;  %v345_v51 = vpop.f32.mrb[1].mxu1 }
 0x2ac   :  { %279 = vst [vmem:[#allocation8] sm:$0xff] %v276_v50 }
 0x2ad   :  { %454 = shalt.err (!%p451_p0)
}
 0x2ae   :  { %s455_s23 = scalar_lea.hbm %s596_s7, 128 }
 0x2af   :  { %p456_p1 = scmp.ne.s32.totalorder %s596_s7, %s455_s23  ;;  %p459_p2 = scmp.lt.u32.totalorder %s455_s23, %s596_s7 }
 0x2b1   :  { %p461_p3 = pnand %p459_p2, %p456_p1 }
 0x2b3   :  { %464 = shalt.err (!%p461_p3)
}
 0x2b4   :  { %289 = dma.vmem_to_hbm [thread:$0]  %s287_s21, 128, %s596_s7, [#allocation4]  }
 0x2b5   :  { %469 = dma.done.wait [#allocation4], 128  }
 0x2b6   :  { %470 = vsyncadd [#allocation4], 4294967168 }
 0x2b7   :  { %293 = vsyncpa [#allocation3], 1 }
 0x2b8   :  { %294 = vsyncpa [#allocation6], 1 }
 0x2b9   :  { %295 = vsyncpa [#allocation4], 1 }

</bundles_post_ra>
